<compile_context>
chip_gen: v5e
topology: v5e:2x2
jax: 0.10.0
libtpu: 0.0.40
codegen_flags: <defaults>
</compile_context>

<pallas_src>
import functools
import math

import jax
import jax.numpy as jnp
from jax import lax
from jax.experimental import pallas as pl
from jax.experimental.pallas import tpu as pltpu

NUM_GROUPS = 32
EPS = 1e-6


def _vmem_limit_bytes():
    """~75% of physical VMEM: ~96 MiB on v5e/v6e (128 MiB), ~48 MiB on v7x (64 MiB)."""
    phys = 64 * 1024 * 1024
    try:
        info = pltpu.get_tpu_info()
        phys = int(getattr(info, "vmem_capacity_bytes", phys))
    except Exception:
        pass
    return max(32 * 1024 * 1024, min((phys * 3) // 4, 112 * 1024 * 1024))


def _buffered_block(shape, index_map, nbuf):
    """BlockSpec with an explicit buffer count (graceful fallback on older jax)."""
    buffered = getattr(pl, "Buffered", None)
    if buffered is not None:
        try:
            return pl.BlockSpec(shape, index_map, pipeline_mode=buffered(nbuf))
        except TypeError:
            pass
    return pl.BlockSpec(shape, index_map)


def _const_block(shape, index_map):
    """Constant-index block -> single-buffer it (saves VMEM, no prefetch needed)."""
    return _buffered_block(shape, index_map, 1)


def _pick_tile(n, cap):
    """Largest divisor of n <= cap stepping by 128 (then 16); falls back to n (no tiling)."""
    if n <= cap:
        return n
    t = (cap // 128) * 128
    while t >= 128:
        if n % t == 0:
            return t
        t -= 128
    t = (cap // 16) * 16
    while t >= 16:
        if n % t == 0:
            return t
        t -= 16
    return n


# ---------------------------------------------------------------------------------------------
# pass 1: GroupNorm statistics (tiled reduction over N) -> per-channel scale / shift
# ---------------------------------------------------------------------------------------------
def gn_stats_kernel(x_ref, gamma_ref, beta_ref, gmap_ref, scale_ref, shift_ref,
                    sum_ref, ssq_ref, *, n_total):
    nt = pl.program_id(1)

    @pl.when(nt == 0)
    def _():
        sum_ref[...] = jnp.zeros_like(sum_ref)
        ssq_ref[...] = jnp.zeros_like(ssq_ref)

    x = x_ref[0]                                              # (tn, C) f32
    sum_ref[...] += jnp.sum(x, axis=0, keepdims=True)         # (1, C)
    ssq_ref[...] += jnp.sum(x * x, axis=0, keepdims=True)     # (1, C)

    @pl.when(nt == pl.num_programs(1) - 1)
    def _():
        gmap = gmap_ref[...]                                  # (C, G) one-hot group map
        c = x.shape[1]
        g = gmap.shape[1]
        inv_cnt = 1.0 / float(n_total * (c // g))
        gsum = jnp.dot(sum_ref[...], gmap, preferred_element_type=jnp.float32)   # (1, G)
        gssq = jnp.dot(ssq_ref[...], gmap, preferred_element_type=jnp.float32)   # (1, G)
        mean_g = gsum * inv_cnt
        var_g = jnp.maximum(gssq * inv_cnt - mean_g * mean_g, 0.0)
        nt_dims = (((1,), (1,)), ((), ()))                    # contract group axis (no gmap.T)
        mean_c = lax.dot_general(mean_g, gmap, nt_dims, preferred_element_type=jnp.float32)
        var_c = lax.dot_general(var_g, gmap, nt_dims, preferred_element_type=jnp.float32)
        rstd_c = lax.rsqrt(var_c + EPS)                       # (1, C)
        scl = rstd_c * gamma_ref[...]
        scale_ref[0] = scl
        shift_ref[0] = beta_ref[...] - mean_c * scl


# ---------------------------------------------------------------------------------------------
# pass 2: normalize + fused K/V 1x1 convs (single (C, 2C) weight push), bf16 outputs
# ---------------------------------------------------------------------------------------------
def kv_kernel(x_ref, scale_ref, shift_ref, wkv_ref, bkv_ref, k_ref, v_ref):
    x = x_ref[0]                                              # (tn, C) f32
    h = (x * scale_ref[0] + shift_ref[0]).astype(jnp.bfloat16)
    kv = jnp.dot(h, wkv_ref[...], preferred_element_type=jnp.float32) + bkv_ref[...]
    c = kv.shape[1] // 2
    k_ref[0] = kv[:, :c].astype(jnp.bfloat16)
    v_ref[0] = kv[:, c:].astype(jnp.bfloat16)


# ---------------------------------------------------------------------------------------------
# pass 3a (main path): K/V resident in VMEM per batch; in-kernel kv loop; q fused in.
# ---------------------------------------------------------------------------------------------
def attn_resident_kernel(x_ref, scale_ref, shift_ref, wq_ref, bq_ref,
                         k_ref, v_ref, wp_ref, bp_ref, out_ref, *, tk):
    x = x_ref[0]                                              # (tq, C) f32
    h = (x * scale_ref[0] + shift_ref[0]).astype(jnp.bfloat16)
    # Wq/bq already carry the C**-0.5 attention scale
    q = (jnp.dot(h, wq_ref[...], preferred_element_type=jnp.float32)
         + bq_ref[...]).astype(jnp.bfloat16)                  # (tq, C) bf16

    tq, c = x.shape
    num_kv = k_ref.shape[1] // tk

    def body(ki, carry):
        m_prev, l_prev, acc_prev = carry
        koff = pl.multiple_of(ki * tk, tk)
        k_blk = k_ref[0, pl.ds(koff, tk), :]                  # (tk, C) bf16 (VMEM-resident)
        v_blk = v_ref[0, pl.ds(koff, tk), :]
        s = lax.dot_general(q, k_blk, (((1,), (1,)), ((), ())),
                            preferred_element_type=jnp.float32)   # (tq, tk) f32, no k.T
        m_new = jnp.maximum(m_prev, jnp.max(s, axis=-1, keepdims=True))
        alpha = jnp.exp(m_prev - m_new)
        p = jnp.exp(s - m_new)                                # f32 softmax numerator
        l_new = alpha * l_prev + jnp.sum(p, axis=-1, keepdims=True)
        acc_new = alpha * acc_prev + jnp.dot(p.astype(jnp.bfloat16), v_blk,
                                             preferred_element_type=jnp.float32)
        return m_new, l_new, acc_new

    m0 = jnp.full((tq, 1), -jnp.inf, jnp.float32)
    l0 = jnp.zeros((tq, 1), jnp.float32)
    a0 = jnp.zeros((tq, c), jnp.float32)
    _, l_f, acc_f = lax.fori_loop(0, num_kv, body, (m0, l0, a0))

    o = acc_f * (1.0 / l_f)                                   # exact f32 reciprocal per row
    proj = jnp.dot(o.astype(jnp.bfloat16), wp_ref[...],
                   preferred_element_type=jnp.float32) + bp_ref[...]
    out_ref[0] = x + proj                                     # residual add (aliased with x)


# ---------------------------------------------------------------------------------------------
# pass 3b (fallback when K/V do not fit VMEM): streamed kv grid axis, large kv tiles.
# ---------------------------------------------------------------------------------------------
def attn_stream_kernel(x_ref, scale_ref, shift_ref, wq_ref, bq_ref,
                       k_ref, v_ref, wp_ref, bp_ref, out_ref,
                       q_scr, m_scr, l_scr, acc_scr):
    ki = pl.program_id(2)

    @pl.when(ki == 0)
    def _():
        x = x_ref[0]
        h = (x * scale_ref[0] + shift_ref[0]).astype(jnp.bfloat16)
        q_scr[...] = (jnp.dot(h, wq_ref[...], preferred_element_type=jnp.float32)
                      + bq_ref[...]).astype(jnp.bfloat16)
        m_scr[...] = jnp.full_like(m_scr, -jnp.inf)
        l_scr[...] = jnp.zeros_like(l_scr)
        acc_scr[...] = jnp.zeros_like(acc_scr)

    s = lax.dot_general(q_scr[...], k_ref[0], (((1,), (1,)), ((), ())),
                        preferred_element_type=jnp.float32)
    m_prev = m_scr[...]
    m_new = jnp.maximum(m_prev, jnp.max(s, axis=-1, keepdims=True))
    alpha = jnp.exp(m_prev - m_new)
    p = jnp.exp(s - m_new)
    l_scr[...] = alpha * l_scr[...] + jnp.sum(p, axis=-1, keepdims=True)
    acc_scr[...] = alpha * acc_scr[...] + jnp.dot(p.astype(jnp.bfloat16), v_ref[0],
                                                  preferred_element_type=jnp.float32)
    m_scr[...] = m_new

    @pl.when(ki == pl.num_programs(2) - 1)
    def _():
        o = acc_scr[...] * (1.0 / l_scr[...])
        proj = jnp.dot(o.astype(jnp.bfloat16), wp_ref[...],
                       preferred_element_type=jnp.float32) + bp_ref[...]
        out_ref[0] = x_ref[0] + proj


# ---------------------------------------------------------------------------------------------
# wrapper
# ---------------------------------------------------------------------------------------------
def attn_block_pallas(x_bnc, params, *, q_tile=512, kv_tile=512, n_tile=1024):
    """x_bnc: (B, N=H*W, C) float32 channels-last flattened-spatial layout."""
    B, N, C = x_bnc.shape
    G = NUM_GROUPS
    assert C % G == 0, "GroupNorm(32, C) requires C % 32 == 0"
    x_bnc = x_bnc.astype(jnp.float32)

    # bf16 MXU operands; fold the attention scale C**-0.5 into the q projection.
    attn_scale = C ** -0.5
    wq = (params["wq"] * attn_scale).astype(jnp.bfloat16)
    bq = (params["bq"] * attn_scale).astype(jnp.float32)
    wkv = jnp.concatenate([params["wk"], params["wv"]], axis=1).astype(jnp.bfloat16)  # (C, 2C)
    bkv = jnp.concatenate([params["bk"], params["bv"]], axis=1).astype(jnp.float32)   # (1, 2C)
    wp = params["wp"].astype(jnp.bfloat16)
    bp = params["bp"].astype(jnp.float32)
    gamma = params["gamma"].astype(jnp.float32)
    beta = params["beta"].astype(jnp.float32)

    # one-hot group-membership matrix: gmap[c, g] = 1 iff channel c belongs to group g
    gmap = jnp.eye(G, dtype=jnp.float32)[jnp.arange(C) // (C // G)]      # (C, G)

    tn = _pick_tile(N, n_tile)
    tq = _pick_tile(N, q_tile)

    vmem_limit = _vmem_limit_bytes()

    def cparams(sems):
        return pltpu.CompilerParams(dimension_semantics=sems,
                                    vmem_limit_bytes=vmem_limit)

    # ---- pass 1: GroupNorm statistics (N-tile reduction axis innermost / arbitrary) ----
    scale_c, shift_c = pl.pallas_call(
        functools.partial(gn_stats_kernel, n_total=N),
        grid=(B, N // tn),
        in_specs=[
            pl.BlockSpec((1, tn, C), lambda b, n: (b, n, 0)),     # x
            _const_block((1, C), lambda b, n: (0, 0)),            # gamma
            _const_block((1, C), lambda b, n: (0, 0)),            # beta
            _const_block((C, G), lambda b, n: (0, 0)),            # group map
        ],
        out_specs=[
            pl.BlockSpec((1, 1, C), lambda b, n: (b, 0, 0)),      # per-channel scale
            pl.BlockSpec((1, 1, C), lambda b, n: (b, 0, 0)),      # per-channel shift
        ],
        out_shape=[jax.ShapeDtypeStruct((B, 1, C), jnp.float32)] * 2,
        scratch_shapes=[pltpu.VMEM((1, C), jnp.float32),
                        pltpu.VMEM((1, C), jnp.float32)],
        compiler_params=cparams(("parallel", "arbitrary")),
    )(x_bnc, gamma, beta, gmap)

    # ---- pass 2: normalize + fused K/V projection (q is produced inside pass 3) ----
    k, v = pl.pallas_call(
        kv_kernel,
        grid=(B, N // tn),
        in_specs=[
            pl.BlockSpec((1, tn, C), lambda b, n: (b, n, 0)),     # x
            pl.BlockSpec((1, 1, C), lambda b, n: (b, 0, 0)),      # scale
            pl.BlockSpec((1, 1, C), lambda b, n: (b, 0, 0)),      # shift
            _const_block((C, 2 * C), lambda b, n: (0, 0)),        # Wkv (bf16, fused)
            _const_block((1, 2 * C), lambda b, n: (0, 0)),        # bkv (f32, fused)
        ],
        out_specs=[pl.BlockSpec((1, tn, C), lambda b, n: (b, n, 0))] * 2,
        out_shape=[jax.ShapeDtypeStruct((B, N, C), jnp.bfloat16)] * 2,
        compiler_params=cparams(("parallel", "parallel")),
    )(x_bnc, scale_c, shift_c, wkv, bkv)

    # ---- pass 3: flash attention (+ fused q projection) + output projection + residual ----
    tk_res = _pick_tile(N, kv_tile)
    kv_bytes = 2 * N * C * 2                                   # K + V bf16, resident per batch
    working = (2 * 2 * tq * C * 4          # x + out blocks, double-buffered, f32
               + 2 * C * C * 2             # Wq + Wp bf16 (single-buffered)
               + tq * C * 2                # q bf16
               + tq * tk_res * 4           # score tile f32
               + 2 * tq * C * 4)           # online-softmax accumulator + normalized o, f32
    resident = (kv_bytes + working) <= int(0.55 * vmem_limit)

    if resident:
        out = pl.pallas_call(
            functools.partial(attn_resident_kernel, tk=tk_res),
            grid=(B, N // tq),
            in_specs=[
                pl.BlockSpec((1, tq, C), lambda b, qi: (b, qi, 0)),      # x (residual + q input)
                pl.BlockSpec((1, 1, C), lambda b, qi: (b, 0, 0)),        # scale
                pl.BlockSpec((1, 1, C), lambda b, qi: (b, 0, 0)),        # shift
                _const_block((C, C), lambda b, qi: (0, 0)),              # Wq (pre-scaled, bf16)
                _const_block((1, C), lambda b, qi: (0, 0)),              # bq (pre-scaled)
                _buffered_block((1, N, C), lambda b, qi: (b, 0, 0), 1),  # K resident per batch
                _buffered_block((1, N, C), lambda b, qi: (b, 0, 0), 1),  # V resident per batch
                _const_block((C, C), lambda b, qi: (0, 0)),              # Wp (bf16)
                _const_block((1, C), lambda b, qi: (0, 0)),              # bp (f32)
            ],
            out_specs=pl.BlockSpec((1, tq, C), lambda b, qi: (b, qi, 0)),
            out_shape=jax.ShapeDtypeStruct((B, N, C), jnp.float32),
            input_output_aliases={0: 0},                                 # residual in-place
            compiler_params=cparams(("parallel", "parallel")),
        )(x_bnc, scale_c, shift_c, wq, bq, k, v, wp, bp)
    else:
        # K/V too large for VMEM residency (relevant on v7x at very large N): stream with
        # large kv tiles so the re-read factor stays small.
        tk_stream = _pick_tile(N, max(kv_tile, 2048))
        out = pl.pallas_call(
            attn_stream_kernel,
            grid=(B, N // tq, N // tk_stream),
            in_specs=[
                pl.BlockSpec((1, tq, C), lambda b, qi, ki: (b, qi, 0)),
                pl.BlockSpec((1, 1, C), lambda b, qi, ki: (b, 0, 0)),
                pl.BlockSpec((1, 1, C), lambda b, qi, ki: (b, 0, 0)),
                _const_block((C, C), lambda b, qi, ki: (0, 0)),
                _const_block((1, C), lambda b, qi, ki: (0, 0)),
                pl.BlockSpec((1, tk_stream, C), lambda b, qi, ki: (b, ki, 0)),
                pl.BlockSpec((1, tk_stream, C), lambda b, qi, ki: (b, ki, 0)),
                _const_block((C, C), lambda b, qi, ki: (0, 0)),
                _const_block((1, C), lambda b, qi, ki: (0, 0)),
            ],
            out_specs=pl.BlockSpec((1, tq, C), lambda b, qi, ki: (b, qi, 0)),
            out_shape=jax.ShapeDtypeStruct((B, N, C), jnp.float32),
            input_output_aliases={0: 0},
            scratch_shapes=[pltpu.VMEM((tq, C), jnp.bfloat16),   # q (computed at ki==0)
                            pltpu.VMEM((tq, 1), jnp.float32),    # running row max
                            pltpu.VMEM((tq, 1), jnp.float32),    # running denominator
                            pltpu.VMEM((tq, C), jnp.float32)],   # unnormalized accumulator
            compiler_params=cparams(("parallel", "parallel", "arbitrary")),
        )(x_bnc, scale_c, shift_c, wq, bq, k, v, wp, bp)
    return out


# ---------------------------------------------------------------------------------------------
# pure-JAX f32 reference mirroring the PyTorch forward (channels-last layout)
# ---------------------------------------------------------------------------------------------
def attn_block_reference(x_bnc, params):
    B, N, C = x_bnc.shape
    G = NUM_GROUPS
    xg = x_bnc.reshape(B, N, G, C // G)
    mean = jnp.mean(xg, axis=(1, 3), keepdims=True)
    var = jnp.mean((xg - mean) ** 2, axis=(1, 3), keepdims=True)
    h = ((xg - mean) / jnp.sqrt(var + EPS)).reshape(B, N, C)
    h = h * params["gamma"][None] + params["beta"][None]
    q = h @ params["wq"] + params["bq"]
    k = h @ params["wk"] + params["bk"]
    v = h @ params["wv"] + params["bv"]
    logits = jnp.einsum("bnc,bmc->bnm", q, k) * (C ** -0.5)
    attn = jax.nn.softmax(logits, axis=-1)
    o = jnp.einsum("bnm,bmc->bnc", attn, v)
    proj = o @ params["wp"] + params["bp"]
    return x_bnc + proj


def make_params(key, C):
    ks = jax.random.split(key, 10)
    scale = 1.0 / math.sqrt(C)
    p = {
        "gamma": jnp.ones((1, C), jnp.float32),
        "beta": jnp.zeros((1, C), jnp.float32),
        # 1x1 conv weights stored as (C_in, C_out) so kernels do h @ W + b
        "wq": jax.random.normal(ks[0], (C, C), jnp.float32) * scale,
        "bq": jax.random.normal(ks[1], (1, C), jnp.float32) * 0.1,
        "wk": jax.random.normal(ks[2], (C, C), jnp.float32) * scale,
        "bk": jax.random.normal(ks[3], (1, C), jnp.float32) * 0.1,
        "wv": jax.random.normal(ks[4], (C, C), jnp.float32) * scale,
        "bv": jax.random.normal(ks[5], (1, C), jnp.float32) * 0.1,
        "wp": jax.random.normal(ks[6], (C, C), jnp.float32) * scale,
        "bp": jax.random.normal(ks[7], (1, C), jnp.float32) * 0.1,
    }
    p["gamma"] = p["gamma"] + 0.1 * jax.random.normal(ks[8], (1, C), jnp.float32)
    p["beta"] = p["beta"] + 0.1 * jax.random.normal(ks[9], (1, C), jnp.float32)
    return p


if __name__ == "__main__":
    # GroupNorm(32, C) requires C % 32 == 0 -> smallest sensible C is 64.
    B, C, H, W = 2, 64, 8, 8
    N = H * W

    key = jax.random.PRNGKey(0)
    kx, kp = jax.random.split(key)
    x_nchw = jax.random.normal(kx, (B, C, H, W), jnp.float32)   # matches PyTorch NCHW input
    params = make_params(kp, C)

    # NCHW -> (B, N, C) channels-last flattened-spatial layout for the kernels
    x_bnc = jnp.transpose(x_nchw, (0, 2, 3, 1)).reshape(B, N, C)

    # reference first: pass 3 aliases the residual input into its output buffer
    ref_bnc = attn_block_reference(x_bnc, params)

    out_bnc = jax.block_until_ready(attn_block_pallas(x_bnc, params))

    err = float(jnp.max(jnp.abs(out_bnc - ref_bnc)))
    # bf16 MXU operands (weights/h/q/k/v/probs) vs f32 reference -> relaxed tolerance
    assert err < 5e-2, f"mismatch vs reference: max abs err = {err}"

    # back to NCHW if a caller wants PyTorch's layout
    out_nchw = jnp.transpose(out_bnc.reshape(B, H, W, C), (0, 3, 1, 2))
    jax.block_until_ready(out_nchw)

    print("KERNEL_OK")
</pallas_src>

<mosaic_0001>
module attributes {stable_mosaic.version = 11 : i64} {
  func.func @gn_stats_kernel(%arg0: i32, %arg1: i32, %arg2: memref<1x64x64xf32, #tpu.memory_space<vmem>>, %arg3: memref<1x64xf32, #tpu.memory_space<vmem>>, %arg4: memref<1x64xf32, #tpu.memory_space<vmem>>, %arg5: memref<64x32xf32, #tpu.memory_space<vmem>>, %arg6: memref<1x1x64xf32, #tpu.memory_space<vmem>>, %arg7: memref<1x1x64xf32, #tpu.memory_space<vmem>>, %arg8: memref<1x64xf32, #tpu.memory_space<vmem>>, %arg9: memref<1x64xf32, #tpu.memory_space<vmem>>) attributes {dimension_semantics = [#tpu.dimension_semantics<parallel>, #tpu.dimension_semantics<arbitrary>], iteration_bounds = array<i64: 2, 1>, scalar_prefetch = 0 : i64, scratch_operands = 2 : i64, tpu.core_type = #tpu.core_type<tc>, window_params = [{transform_indices = @transform_0, window_bounds = array<i64: 1, 64, 64>}, {pipeline_mode = #tpu.pipeline_mode<synchronous>, transform_indices = @transform_1, window_bounds = array<i64: 1, 64>}, {pipeline_mode = #tpu.pipeline_mode<synchronous>, transform_indices = @transform_2, window_bounds = array<i64: 1, 64>}, {pipeline_mode = #tpu.pipeline_mode<synchronous>, transform_indices = @transform_3, window_bounds = array<i64: 64, 32>}, {transform_indices = @transform_4, window_bounds = array<i64: 1, 1, 64>}, {transform_indices = @transform_5, window_bounds = array<i64: 1, 1, 64>}]} {
    %c0_i32 = arith.constant 0 : i32
    %0 = arith.cmpi eq, %arg1, %c0_i32 : i32
    %1 = arith.extui %0 : i1 to i32
    %c0_i32_0 = arith.constant 0 : i32
    %2 = arith.cmpi ne, %1, %c0_i32_0 : i32
    scf.if %2 {
      %cst_14 = arith.constant 0.000000e+00 : f32
      %19 = vector.broadcast %cst_14 : f32 to vector<1x64xf32>
      %c0_15 = arith.constant 0 : index
      %c0_16 = arith.constant 0 : index
      %20 = vector.load %arg8[%c0_15, %c0_16] : memref<1x64xf32, #tpu.memory_space<vmem>>, vector<1x64xf32>
      tpu.vector_store %arg8[%c0_15, %c0_16], %19 {strides = array<i32>} : memref<1x64xf32, #tpu.memory_space<vmem>>, vector<1x64xf32>,
      %cst_17 = arith.constant 0.000000e+00 : f32
      %21 = vector.broadcast %cst_17 : f32 to vector<1x64xf32>
      %c0_18 = arith.constant 0 : index
      %c0_19 = arith.constant 0 : index
      %22 = vector.load %arg9[%c0_18, %c0_19] : memref<1x64xf32, #tpu.memory_space<vmem>>, vector<1x64xf32>
      tpu.vector_store %arg9[%c0_18, %c0_19], %21 {strides = array<i32>} : memref<1x64xf32, #tpu.memory_space<vmem>>, vector<1x64xf32>,
    } else {
    }
    %c0 = arith.constant 0 : index
    %c0_1 = arith.constant 0 : index
    %c0_2 = arith.constant 0 : index
    %3 = vector.load %arg2[%c0, %c0_1, %c0_2] : memref<1x64x64xf32, #tpu.memory_space<vmem>>, vector<1x64x64xf32>
    %4 = vector.shape_cast %3 : vector<1x64x64xf32> to vector<64x64xf32>
    %c0_3 = arith.constant 0 : index
    %c0_4 = arith.constant 0 : index
    %5 = vector.load %arg8[%c0_3, %c0_4] : memref<1x64xf32, #tpu.memory_space<vmem>>, vector<1x64xf32>
    %cst = arith.constant dense<0.000000e+00> : vector<64xf32>
    %6 = vector.multi_reduction <add>, %4, %cst [0] : vector<64x64xf32> to vector<64xf32>
    %7 = vector.shape_cast %6 : vector<64xf32> to vector<1x64xf32>
    %8 = arith.addf %5, %7 : vector<1x64xf32>
    %c0_5 = arith.constant 0 : index
    %c0_6 = arith.constant 0 : index
    %9 = vector.load %arg8[%c0_5, %c0_6] : memref<1x64xf32, #tpu.memory_space<vmem>>, vector<1x64xf32>
    tpu.vector_store %arg8[%c0_5, %c0_6], %8 {strides = array<i32>} : memref<1x64xf32, #tpu.memory_space<vmem>>, vector<1x64xf32>,
    %c0_7 = arith.constant 0 : index
    %c0_8 = arith.constant 0 : index
    %10 = vector.load %arg9[%c0_7, %c0_8] : memref<1x64xf32, #tpu.memory_space<vmem>>, vector<1x64xf32>
    %11 = arith.mulf %4, %4 : vector<64x64xf32>
    %cst_9 = arith.constant dense<0.000000e+00> : vector<64xf32>
    %12 = vector.multi_reduction <add>, %11, %cst_9 [0] : vector<64x64xf32> to vector<64xf32>
    %13 = vector.shape_cast %12 : vector<64xf32> to vector<1x64xf32>
    %14 = arith.addf %10, %13 : vector<1x64xf32>
    %c0_10 = arith.constant 0 : index
    %c0_11 = arith.constant 0 : index
    %15 = vector.load %arg9[%c0_10, %c0_11] : memref<1x64xf32, #tpu.memory_space<vmem>>, vector<1x64xf32>
    tpu.vector_store %arg9[%c0_10, %c0_11], %14 {strides = array<i32>} : memref<1x64xf32, #tpu.memory_space<vmem>>, vector<1x64xf32>,
    %c0_i32_12 = arith.constant 0 : i32
    %16 = arith.cmpi eq, %arg1, %c0_i32_12 : i32
    %17 = arith.extui %16 : i1 to i32
    %c0_i32_13 = arith.constant 0 : i32
    %18 = arith.cmpi ne, %17, %c0_i32_13 : i32
    scf.if %18 {
      %c0_14 = arith.constant 0 : index
      %c0_15 = arith.constant 0 : index
      %19 = vector.load %arg5[%c0_14, %c0_15] : memref<64x32xf32, #tpu.memory_space<vmem>>, vector<64x32xf32>
      %c0_16 = arith.constant 0 : index
      %c0_17 = arith.constant 0 : index
      %20 = vector.load %arg8[%c0_16, %c0_17] : memref<1x64xf32, #tpu.memory_space<vmem>>, vector<1x64xf32>
      %cst_18 = arith.constant dense<0.000000e+00> : vector<1x32xf32>
      %21 = tpu.matmul %20, %19, %cst_18 {dimension_numbers = #tpu.dot_dimension_numbers<[1], [0], [0], [1], [0, 0, 1, 1], [], []>} : vector<1x64xf32>, vector<64x32xf32>, vector<1x32xf32> -> vector<1x32xf32>
      %c0_19 = arith.constant 0 : index
      %c0_20 = arith.constant 0 : index
      %22 = vector.load %arg9[%c0_19, %c0_20] : memref<1x64xf32, #tpu.memory_space<vmem>>, vector<1x64xf32>
      %cst_21 = arith.constant dense<0.000000e+00> : vector<1x32xf32>
      %23 = tpu.matmul %22, %19, %cst_21 {dimension_numbers = #tpu.dot_dimension_numbers<[1], [0], [0], [1], [0, 0, 1, 1], [], []>} : vector<1x64xf32>, vector<64x32xf32>, vector<1x32xf32> -> vector<1x32xf32>
      %cst_22 = arith.constant 7.812500e-03 : f32
      %24 = vector.broadcast %cst_22 : f32 to vector<1x32xf32>
      %25 = arith.mulf %21, %24 : vector<1x32xf32>
      %cst_23 = arith.constant 7.812500e-03 : f32
      %26 = vector.broadcast %cst_23 : f32 to vector<1x32xf32>
      %27 = arith.mulf %23, %26 : vector<1x32xf32>
      %28 = arith.mulf %25, %25 : vector<1x32xf32>
      %29 = arith.subf %27, %28 : vector<1x32xf32>
      %cst_24 = arith.constant 0.000000e+00 : f32
      %30 = vector.broadcast %cst_24 : f32 to vector<1x32xf32>
      %31 = arith.maximumf %29, %30 : vector<1x32xf32>
      %cst_25 = arith.constant dense<0.000000e+00> : vector<1x64xf32>
      %32 = tpu.matmul %25, %19, %cst_25 {dimension_numbers = #tpu.dot_dimension_numbers<[1], [1], [0], [0], [0, 0, 1, 0], [], []>} : vector<1x32xf32>, vector<64x32xf32>, vector<1x64xf32> -> vector<1x64xf32>
      %cst_26 = arith.constant dense<0.000000e+00> : vector<1x64xf32>
      %33 = tpu.matmul %31, %19, %cst_26 {dimension_numbers = #tpu.dot_dimension_numbers<[1], [1], [0], [0], [0, 0, 1, 0], [], []>} : vector<1x32xf32>, vector<64x32xf32>, vector<1x64xf32> -> vector<1x64xf32>
      %cst_27 = arith.constant 9.99999997E-7 : f32
      %34 = vector.broadcast %cst_27 : f32 to vector<1x64xf32>
      %35 = arith.addf %33, %34 : vector<1x64xf32>
      %36 = math.rsqrt %35 : vector<1x64xf32>
      %c0_28 = arith.constant 0 : index
      %c0_29 = arith.constant 0 : index
      %37 = vector.load %arg3[%c0_28, %c0_29] : memref<1x64xf32, #tpu.memory_space<vmem>>, vector<1x64xf32>
      %38 = arith.mulf %36, %37 : vector<1x64xf32>
      %c0_30 = arith.constant 0 : index
      %c0_31 = arith.constant 0 : index
      %c0_32 = arith.constant 0 : index
      %39 = vector.load %arg6[%c0_30, %c0_31, %c0_32] : memref<1x1x64xf32, #tpu.memory_space<vmem>>, vector<1x1x64xf32>
      %40 = vector.shape_cast %39 : vector<1x1x64xf32> to vector<1x64xf32>
      %41 = vector.shape_cast %38 : vector<1x64xf32> to vector<1x1x64xf32>
      tpu.vector_store %arg6[%c0_30, %c0_31, %c0_32], %41 {strides = array<i32>} : memref<1x1x64xf32, #tpu.memory_space<vmem>>, vector<1x1x64xf32>,
      %c0_33 = arith.constant 0 : index
      %c0_34 = arith.constant 0 : index
      %42 = vector.load %arg4[%c0_33, %c0_34] : memref<1x64xf32, #tpu.memory_space<vmem>>, vector<1x64xf32>
      %43 = arith.mulf %32, %38 : vector<1x64xf32>
      %44 = arith.subf %42, %43 : vector<1x64xf32>
      %c0_35 = arith.constant 0 : index
      %c0_36 = arith.constant 0 : index
      %c0_37 = arith.constant 0 : index
      %45 = vector.load %arg7[%c0_35, %c0_36, %c0_37] : memref<1x1x64xf32, #tpu.memory_space<vmem>>, vector<1x1x64xf32>
      %46 = vector.shape_cast %45 : vector<1x1x64xf32> to vector<1x64xf32>
      %47 = vector.shape_cast %44 : vector<1x64xf32> to vector<1x1x64xf32>
      tpu.vector_store %arg7[%c0_35, %c0_36, %c0_37], %47 {strides = array<i32>} : memref<1x1x64xf32, #tpu.memory_space<vmem>>, vector<1x1x64xf32>,
    } else {
    }
    return
  }
  func.func @transform_0(%arg0: i32, %arg1: i32) -> (i32, i32, i32) {
    %c0_i32 = arith.constant 0 : i32
    %c0_i32_0 = arith.constant 0 : i32
    return %arg0, %arg1, %c0_i32 : i32, i32, i32
  }
  func.func @transform_1(%arg0: i32, %arg1: i32) -> (i32, i32) {
    %c0_i32 = arith.constant 0 : i32
    %c0_i32_0 = arith.constant 0 : i32
    %c0_i32_1 = arith.constant 0 : i32
    return %c0_i32, %c0_i32_0 : i32, i32
  }
  func.func @transform_2(%arg0: i32, %arg1: i32) -> (i32, i32) {
    %c0_i32 = arith.constant 0 : i32
    %c0_i32_0 = arith.constant 0 : i32
    %c0_i32_1 = arith.constant 0 : i32
    return %c0_i32, %c0_i32_0 : i32, i32
  }
  func.func @transform_3(%arg0: i32, %arg1: i32) -> (i32, i32) {
    %c0_i32 = arith.constant 0 : i32
    %c0_i32_0 = arith.constant 0 : i32
    %c0_i32_1 = arith.constant 0 : i32
    return %c0_i32, %c0_i32_0 : i32, i32
  }
  func.func @transform_4(%arg0: i32, %arg1: i32) -> (i32, i32, i32) {
    %c0_i32 = arith.constant 0 : i32
    %c0_i32_0 = arith.constant 0 : i32
    %c0_i32_1 = arith.constant 0 : i32
    return %arg0, %c0_i32, %c0_i32_0 : i32, i32, i32
  }
  func.func @transform_5(%arg0: i32, %arg1: i32) -> (i32, i32, i32) {
    %c0_i32 = arith.constant 0 : i32
    %c0_i32_0 = arith.constant 0 : i32
    %c0_i32_1 = arith.constant 0 : i32
    return %arg0, %c0_i32, %c0_i32_0 : i32, i32, i32
  }
}

</mosaic_0001>

<bundles_post_ra>
// kernel: tpu_custom_call.1
= control target key start
LH: loop header
LB: loop body
LE: loop exit
PB: predicated region body
PF: predicated region fallthrough
CT: control target
= control target key end

     0   :  { %11 = vsyncpa [#allocation5], 0  ;;  %s1181_s0 = inlined_call_operand.hbm [shape: f32[2,64,64], index: 0, kind: input, shape index: {}]   ;;  %s1182_s1 = inlined_call_operand.vmem [shape: f32[1,64], index: 1, kind: input, shape index: {}]   ;;  %s1183_s2 = inlined_call_operand.vmem [shape: f32[1,64], index: 2, kind: input, shape index: {}]   ;;  %s1184_s3 = inlined_call_operand.vmem [shape: f32[64,32], index: 3, kind: input, shape index: {}]   ;;  %s1185_s4 = inlined_call_operand.hbm [shape: f32[2,1,64], index: 4, kind: output, shape index: {0}]   ;;  %s1186_s5 = inlined_call_operand.hbm [shape: f32[2,1,64], index: 5, kind: output, shape index: {1}]  }
   0x1   :  { %13 = vsyncpa [#allocation5 + $0x1], 0 }
   0x2   :  { %14 = vsyncpa [#allocation6], 0 }
   0x3   :  { %16 = vsyncpa [#allocation6 + $0x1], 0 }
   0x4   :  { %17 = vsyncpa [#allocation9], 0 }
   0x5   :  { %19 = vsyncpa [#allocation9 + $0x1], 0  ;;  %s914_s18 = smov 0   ;;  %s916_s19 = smov 0  }
   0x6   :  { %s918_s20 = smov 0   ;;  %s920_s21 = smov 0  }
   0x7   :  { %s922_s22 = smov 0   ;;  %s924_s23 = smov 0  }
   0x8 LB: > { %s631_s24 = sadd.s32 4294967295, %s879_s23   ;;  %s632_s25 = sadd.s32 4294967294, %s879_s23   ;;  %s879_s23 = sphi %s924_s23, %s25_s23   ;;  %s875_s22 = sphi %s922_s22, %s1195_s22   ;;  %s871_s21 = sphi %s920_s21, %s1194_s21   ;;  %s867_s20 = sphi %s918_s20, %s1193_s20   ;;  %s863_s19 = sphi %s916_s19, %s1192_s19   ;;  %s859_s18 = sphi %s914_s18, %s1191_s18  }
   0x9   : > { %s37_s26 = sadd.s32 1, %s875_s22  ;;  %s46_s27 = sadd.s32 1, %s867_s20 }
   0xa   : > { %p39_p0 = scmp.ge.s32.totalorder %s37_s26, 2  ;;  %p53_p1 = scmp.ne.s32.totalorder %s867_s20, %s863_s19 }
   0xb   : > { %p54_p2 = scmp.eq.s32.totalorder %s879_s23, 0  ;;  %p59_p3 = scmp.ne.s32.totalorder %s863_s19, %s859_s18 }
   0xc   : > { %s1197_s26 = smov (%p39_p0, %s37_s26), 0  ;;  %p60_p5 = scmp.eq.s32.totalorder %s631_s24, 0 }
   0xd   : > { %p955_p4 = por %p54_p2, %p53_p1  ;;  %s41_s29 = ssub.s32 %s875_s22, %s1197_s26 }
   0xe   : > { %p146_p6 = scmp.eq.s32.totalorder %s631_s24, 1  ;;  %p44_p7 = scmp.eq.s32.totalorder %s41_s29, 0 }
   0xf   : > { %p961_p8 = por %p60_p5, %p59_p3  ;;  %p152_p10 = scmp.eq.s32.totalorder %s632_s25, 1 }
  0x10   : > { %p965_p9 = por %p146_p6, %p53_p1  ;;  %p634_p12 = scmp.ge.s32.totalorder %s879_s23, 2 }
  0x11   : > { %s970_s7 = scalar_select %p44_p7, %s867_s20, %s46_s27  }
  0x12   : > { %p972_p11 = por %p152_p10, %p59_p3  ;;  %p680_p13 = scmp.lt.s32.totalorder %s879_s23, 2 }
  0x13   : > { %s207_s9 = sand.u32 1, %s867_s20   ;;  %s662_s11 = sshll.u32 %s875_s22, 6 }
  0x14   : > { %s635_s10 = sshll.u32 %s207_s9, 6  ;;  %s218_s14 = scalar_lea.hbm %s1181_s0, %s662_s11 }
  0x15   : > { %s211_s15 = scalar_lea.vmem [#allocation4], %s635_s10  ;;  %s219_s17 = sshll.u32 %s218_s14, 4  ;;  %s220_s17 = int_to_ptr.hbm [resolvable:$true] %s219_s17 }
  0x16   : > { %s221_s16 = sshll.u32 %s211_s15, 4  ;;  %p670_p0 = pnand %p680_p13, %p955_p4  ;;  %s222_s16 = int_to_ptr.vmem [resolvable:$true] %s221_s16 }
  0x17   : > { %p638_p1 = scmp.ge.s32.totalorder %s879_s23, 1  ;;  %s208_s24 = scalar_lea.sflag [#allocation5], %s207_s9 }
  0x18   : > { %s881_s25 = smov 128   ;;  %s882_s27 = smov 8  }
  0x19   : > { %672 = dma.hbm_to_vmem [thread:$0]  (!%p670_p0), %s220_s17, 1024, %s222_s16, %s208_s24, %s881_s25, %s881_s25, %s882_s27  }
  0x1a   : > { %p229_p2 = scmp.lt.s32.totalorder %s879_s23, 3 }
  0x1c   : > { %p230_p3 = pnand %p638_p1, %p229_p2 }
  0x1d   : > { %s988_s29 = sand.u32 (!%p230_p3), 1, %s863_s19  }
  0x1e   : > { %233 = sbr.rel (%p230_p3) target bundleno = 379 (0x17b), region = 36  ;;  %s639_s10 = sshll.u32 (!%p230_p3), %s988_s29, 6 }
  0x1f   : > { %s236_s11 = scalar_lea.sflag (!%p230_p3), [#allocation5], %s988_s29  ;;  %s992_s12 = scalar_lea.vmem (!%p230_p3), [#allocation4], %s639_s10 }
  0x23   : > { %846 = dma.done.wait (%p961_p8), %s236_s11, 1024  }
  0x24   : > { %848 = vsyncadd (%p961_p8), %s236_s11, 4294966272  ;;  %vm275_vm0 = vcmask 516096   ;;  %v883_v0 = vmov 0.0   ;;  %v1003_v1 = vld [vmem:[%s1184_s3 + $0x38] sm:$0xff]  ;;  %v1008_v2 = vld [vmem:[%s1184_s3 + $0x30] sm:$0xff]  ;;  %vm287_vm1 = vcmask 523264   ;;  %s509_s30 = scalar_lea.hbm %s1185_s4, %s871_s21  ;;  %s522_s11 = scalar_lea.hbm %s1186_s5, %s871_s21 }
  0x25   : > { %276 = vst.msk [vmem:[#allocation2] sm:$0x1] %vm275_vm0, %v883_v0  ;;  %367 = vmatpush.msra.mxu0 %v1003_v1  ;;  %391 = vmatpush.msra.mxu1 %v1003_v1  ;;  %v1015_v3 = vld [vmem:[%s1184_s3 + $0x28] sm:$0xff]  ;;  %v280_v6 = vld [vmem:[%s992_s12 + $0x10] sm:$0xff]  ;;  %v281_v7 = vld [vmem:[%s992_s12 + $0x18] sm:$0xff]  ;;  %vm408_vm2 = vcmask 261120  }
  0x26   : > { %277 = vst.msk [vmem:[#allocation3] sm:$0x1] %vm275_vm0, %v883_v0  ;;  %v278_v4 = vld [vmem:[%s992_s12] sm:$0xff]  ;;  %v279_v5 = vld [vmem:[%s992_s12 + $0x8] sm:$0xff]  ;;  %v291_v12 = vsel %vm287_vm1, %v280_v6, 0.0  ;;  %v1037_v16 = vld [vmem:[%s1184_s3 + $0x18] sm:$0xff]  ;;  %v315_v18 = vmul.f32 %v280_v6, %v280_v6  ;;  %v316_v19 = vmul.f32 %v281_v7, %v281_v7  ;;  %642 = vmatpush.xpose.msk.msra.mxu2 %vm408_vm2, %v1003_v1  ;;  %651 = vmatpush.xpose.msk.msra.mxu3 %vm408_vm2, %v1003_v1 }
  0x27   : > { %368 = vmatpush.msra.mxu0 %v1008_v2  ;;  %392 = vmatpush.msra.mxu1 %v1008_v2  ;;  %v288_v8 = vsel %vm287_vm1, %v278_v4, 0.0  ;;  %v313_v9 = vmul.f32 %v278_v4, %v278_v4  ;;  %v1027_v10 = vld [vmem:[%s1184_s3 + $0x20] sm:$0xff]  ;;  %v289_v11 = vsel %vm287_vm1, %v279_v5, 0.0  ;;  %v314_v13 = vmul.f32 %v279_v5, %v279_v5  ;;  %v283_v20 = vld [vmem:[%s992_s12 + $0x28] sm:$0xff]  ;;  %v284_v28 = vld [vmem:[%s992_s12 + $0x30] sm:$0xff]  ;;  %s263_s17 = scalar_lea.vmem [#allocation7], %s988_s29 }
  0x28   : > { %v282_v14 = vld [vmem:[%s992_s12 + $0x20] sm:$0xff]  ;;  %v290_v15 = vadd.f32 %v289_v11, %v288_v8  ;;  %v293_v17 = vsel %vm287_vm1, %v281_v7, 0.0  ;;  %v1047_v23 = vld [vmem:[%s1184_s3 + $0x10] sm:$0xff]  ;;  %v324_v27 = vsel %vm287_vm1, %v315_v18, 0.0  ;;  %v297_v32 = vsel %vm287_vm1, %v283_v20, 0.0  ;;  %v285_v35 = vld [vmem:[%s992_s12 + $0x38] sm:$0xff] }
  0x29   : > { %369 = vmatpush.msra.mxu0 %v1015_v3  ;;  %393 = vmatpush.msra.mxu1 %v1015_v3  ;;  %v321_v22 = vsel %vm287_vm1, %v313_v9, 0.0  ;;  %v295_v24 = vsel %vm287_vm1, %v282_v14, 0.0  ;;  %v317_v25 = vmul.f32 %v282_v14, %v282_v14  ;;  %v322_v26 = vsel %vm287_vm1, %v314_v13, 0.0  ;;  %v348_v31 = vld [vmem:[%s1184_s3 + $0x8] sm:$0xff]  ;;  %v347_v38 = vld [vmem:[%s1184_s3] sm:$0xff]  ;;  %s1114_s24 = sshll.u32 %s263_s17, 4  ;;  %s512_s24 = int_to_ptr.vmem [resolvable:$true] %s1114_s24 }
  0x2a   : > { %v292_v21 = vadd.f32 %v291_v12, %v290_v15  ;;  %v323_v30 = vadd.f32 %v322_v26, %v321_v22  ;;  %v318_v33 = vmul.f32 %v283_v20, %v283_v20  ;;  %v326_v34 = vsel %vm287_vm1, %v316_v19, 0.0  ;;  %643 = vmatpush.xpose.msk.msra.mxu2 %vm408_vm2, %v1008_v2  ;;  %652 = vmatpush.xpose.msk.msra.mxu3 %vm408_vm2, %v1008_v2  ;;  %s1116_s25 = sshll.u32 %s509_s30, 4  ;;  %s269_s13 = scalar_lea.vmem [#allocation8], %s988_s29  ;;  %s514_s25 = int_to_ptr.hbm [resolvable:$true] %s1116_s25 }
  0x2b   : > { %370 = vmatpush.msra.mxu0 %v1027_v10  ;;  %394 = vmatpush.msra.mxu1 %v1027_v10  ;;  %v299_v39 = vsel %vm287_vm1, %v284_v28, 0.0  ;;  %v319_v40 = vmul.f32 %v284_v28, %v284_v28  ;;  %v328_v41 = vsel %vm287_vm1, %v317_v25, 0.0  ;;  %v301_v44 = vsel %vm287_vm1, %v285_v35, 0.0  ;;  %v492_v28 = vld [vmem:[%s1183_s2] sm:$0x1]  ;;  %s1128_s12 = sshll.u32 %s269_s13, 4  ;;  %s525_s12 = int_to_ptr.vmem [resolvable:$true] %s1128_s12 }
  0x2c   : > { %v294_v29 = vadd.f32 %v293_v17, %v292_v21  ;;  %v325_v37 = vadd.f32 %v324_v27, %v323_v30  ;;  %v320_v45 = vmul.f32 %v285_v35, %v285_v35  ;;  %v330_v46 = vsel %vm287_vm1, %v318_v33, 0.0  ;;  %v286_v63 = vld [vmem:[#allocation2] sm:$0x1]  ;;  %s1130_s14 = sshll.u32 %s522_s11, 4  ;;  %s497_s30 = scalar_lea.sflag [#allocation6], %s988_s29  ;;  %s527_s14 = int_to_ptr.hbm [resolvable:$true] %s1130_s14 }
  0x2d   : > { %371 = vmatpush.msra.mxu0 %v1037_v16  ;;  %395 = vmatpush.msra.mxu1 %v1037_v16  ;;  %v332_v49 = vsel %vm287_vm1, %v319_v40, 0.0  ;;  %v312_v4 = vld [vmem:[#allocation3] sm:$0x1]  ;;  %s779_s21 = sshra.s32 %s514_s25, 4  ;;  %s785_s10 = scalar_lea.hbm %s1185_s4, 2  ;;  %s780_s21 = int_to_ptr.hbm [resolvable:$true] %s779_s21 }
  0x2e   : > { %v296_v36 = vadd.f32 %v295_v24, %v294_v29  ;;  %v327_v43 = vadd.f32 %v326_v34, %v325_v37  ;;  %v334_v52 = vsel %vm287_vm1, %v320_v45, 0.0  ;;  %644 = vmatpush.xpose.msk.msra.mxu2 %vm408_vm2, %v1015_v3  ;;  %653 = vmatpush.xpose.msk.msra.mxu3 %vm408_vm2, %v1015_v3  ;;  %v489_v24 = vld [vmem:[%s1182_s1] sm:$0x1]  ;;  %s781_s15 = scalar_lea.hbm %s780_s21, 1  ;;  %p786_p7 = scmp.lt.s32.totalorder %s780_s21, %s1185_s4 }
  0x2f   : > { %372 = vmatpush.msra.mxu0 %v1047_v23  ;;  %396 = vmatpush.msra.mxu1 %v1047_v23  ;;  %p782_p4 = scmp.ne.s32.totalorder %s780_s21, %s781_s15  ;;  %p787_p8 = scmp.lt.s32.totalorder %s785_s10, %s781_s15 }
  0x30   : > { %v298_v42 = vadd.f32 %v297_v32, %v296_v36  ;;  %v329_v48 = vadd.f32 %v328_v41, %v327_v43 }
  0x31   : > { %373 = vmatpush.msra.mxu0 %v348_v31  ;;  %397 = vmatpush.msra.mxu1 %v348_v31  ;;  %p783_p5 = pnand %p782_p4, %p965_p9  ;;  %p788_p10 = por %p787_p8, %p786_p7 }
  0x32   : > { %v300_v47 = vadd.f32 %v299_v39, %v298_v42  ;;  %v331_v51 = vadd.f32 %v330_v46, %v329_v48  ;;  %645 = vmatpush.xpose.msk.msra.mxu2 %vm408_vm2, %v1027_v10  ;;  %654 = vmatpush.xpose.msk.msra.mxu3 %vm408_vm2, %v1027_v10 }
  0x33   : > { %374 = vmatpush.msra.mxu0 %v347_v38  ;;  %398 = vmatpush.msra.mxu1 %v347_v38  ;;  %p784_p6 = pneg %p783_p5 }
  0x34   : > { %v302_v50 = vadd.f32 %v301_v44, %v300_v47  ;;  %v333_v54 = vadd.f32 %v332_v49, %v331_v51 }
  0x35   : > { %p789_p13 = pnand %p788_p10, %p784_p6 }
  0x36   : > { %v303_v53 = vrot.slane %v302_v50, 4  ;;  %v335_v56 = vadd.f32 %v334_v52, %v333_v54  ;;  %646 = vmatpush.xpose.msk.msra.mxu2 %vm408_vm2, %v1037_v16  ;;  %655 = vmatpush.xpose.msk.msra.mxu3 %vm408_vm2, %v1037_v16 }
  0x38   : > { %v304_v55 = vadd.f32 %v303_v53, %v302_v50  ;;  %v336_v58 = vrot.slane %v335_v56, 4 }
  0x3a   : > { %v305_v57 = vrot.slane %v304_v55, 2  ;;  %v337_v60 = vadd.f32 %v336_v58, %v335_v56  ;;  %647 = vmatpush.xpose.msk.msra.mxu2 %vm408_vm2, %v1047_v23  ;;  %656 = vmatpush.xpose.msk.msra.mxu3 %vm408_vm2, %v1047_v23 }
  0x3c   : > { %v306_v59 = vadd.f32 %v305_v57, %v304_v55  ;;  %v338_v62 = vrot.slane %v337_v60, 2 }
  0x3e   : > { %v307_v61 = vrot.slane %v306_v59, 1  ;;  %v339_v1 = vadd.f32 %v338_v62, %v337_v60  ;;  %648 = vmatpush.xpose.msk.msra.mxu2 %vm408_vm2, %v348_v31  ;;  %657 = vmatpush.xpose.msk.msra.mxu3 %vm408_vm2, %v348_v31 }
  0x40   : > { %v308_v0 = vadd.f32 %v307_v61, %v306_v59  ;;  %v340_v3 = vrot.slane %v339_v1, 1 }
  0x42   : > { %v309_v2 = vadd.f32 %v308_v0, %v286_v63  ;;  %v341_v5 = vadd.f32 %v340_v3, %v339_v1  ;;  %649 = vmatpush.xpose.msk.msra.mxu2 %vm408_vm2, %v347_v38  ;;  %658 = vmatpush.xpose.msk.msra.mxu3 %vm408_vm2, %v347_v38 }
  0x44   : > { %311 = vst.msk [vmem:[#allocation2] sm:$0x1] %vm275_vm0, %v309_v2  ;;  %v342_v6 = vadd.f32 %v341_v5, %v312_v4 }
  0x46   : > { %343 = vst.msk [vmem:[#allocation3] sm:$0x1] %vm275_vm0, %v342_v6 }
  0x4b   : > { %v355_v7 = vld [vmem:[#allocation2] sm:$0x1] }
  0x4c   : > { %640 = vmatmul.msk.f32.vlgmr.msra.gmra.mxu0 %vm287_vm1, %v355_v7 }
  0x4d   : > { %v379_v8 = vld [vmem:[#allocation3] sm:$0x1] }
  0x4e   : > { %641 = vmatmul.msk.f32.vlgmr.msra.gmra.mxu1 %vm287_vm1, %v379_v8 }
  0xc9   : > { %v376_v9 = vpop.f32.mrf.mxu0 }
  0xca   : > { %v403_v10 = vmul.f32 0.0078125, %v376_v9 }
  0xcb   : > { %v400_v12 = vpop.f32.mrf.mxu1 }
  0xcc   : > { %v405_v11 = vmul.f32 %v403_v10, %v403_v10  ;;  %650 = vmatmul.msk.f32.vlgmr.msra.gmra.mxu2 %vm408_vm2, %v403_v10  ;;  %v404_v13 = vmul.f32 0.0078125, %v400_v12 }
  0xce   : > { %v406_v14 = vsub.f32 %v404_v13, %v405_v11 }
  0xd0   : > { %v407_v15 = vmax.f32 %v406_v14, 0.0 }
  0xd2   : > { %659 = vmatmul.msk.f32.vlgmr.msra.gmra.mxu3 %vm408_vm2, %v407_v15 }
 0x14f   : > { %v453_v27 = vpop.f32.mrf.mxu2 }
 0x155   : > { %v476_v16 = vpop.f32.mrf.mxu3 }
 0x156   : > { %v477_v17 = vadd.f32 1e-06, %v476_v16 }
 0x158   : > { %733 = vrsqrt.f32 %v477_v17  ;;  %vm485_vm4 = vweird.f32 %v477_v17 }
 0x15e   : > { %v734_v18 = vpop.eup %733 }
 0x15f   : > { %v480_v19 = vmul.f32 %v734_v18, %v477_v17  ;;  %vm486_vm3 = vweird.f32 %v734_v18 }
 0x160   : > { %vm487_vm5 = vmor %vm485_vm4, %vm486_vm3 }
 0x161   : > { %v481_v20 = vmul.f32 %v734_v18, %v480_v19 }
 0x163   : > { %v482_v21 = vmul.f32 0.5, %v481_v20 }
 0x165   : > { %v483_v22 = vsub.f32 1.5, %v482_v21 }
 0x167   : > { %v484_v23 = vmul.f32 %v734_v18, %v483_v22 }
 0x169   : > { %v488_v25 = vsel %vm487_vm5, %v734_v18, %v484_v23 }
 0x16a   : > { %v490_v26 = vmul.f32 %v489_v24, %v488_v25 }
 0x16c   : > { %v493_v29 = vmul.f32 %v490_v26, %v453_v27  ;;  %491 = vst.msk [vmem:[%s263_s17] sm:$0x1] %vm275_vm0, %v490_v26 }
 0x16d   : > { %792 = shalt.err (!%p789_p13)
}
 0x16e   : > { %665 = dma.vmem_to_hbm [thread:$0]  (%p965_p9), %s512_s24, 16, %s514_s25, %s497_s30   ;;  %v494_v30 = vsub.f32 %v492_v28, %v493_v29 }
 0x16f   : > { %s501_s17 = scalar_lea.sflag [#allocation9], %s988_s29  ;;  %s807_s11 = sshra.s32 %s527_s14, 4  ;;  %s808_s11 = int_to_ptr.hbm [resolvable:$true] %s807_s11 }
 0x170   : > { %495 = vst.msk [vmem:[%s269_s13] sm:$0x1] %vm275_vm0, %v494_v30  ;;  %s809_s21 = scalar_lea.hbm %s808_s11, 1  ;;  %s813_s27 = scalar_lea.hbm %s1186_s5, 2 }
 0x171   : > { %p810_p0 = scmp.ne.s32.totalorder %s808_s11, %s809_s21  ;;  %p814_p3 = scmp.lt.s32.totalorder %s808_s11, %s1186_s5 }
 0x172   : > { %p815_p4 = scmp.lt.s32.totalorder %s813_s27, %s809_s21 }
 0x173   : > { %p811_p1 = pnand %p810_p0, %p965_p9 }
 0x174   : > { %p816_p5 = por %p815_p4, %p814_p3 }
 0x175   : > { %p812_p2 = pneg %p811_p1 }
 0x177   : > { %p817_p6 = pnand %p816_p5, %p812_p2 }
 0x179   : > { %820 = shalt.err (!%p817_p6)
}
 0x17a   : > { %666 = dma.vmem_to_hbm [thread:$0]  (%p965_p9), %s525_s12, 16, %s527_s14, %s501_s17  }
 0x17b PF: > { %s538_s29 = sand.u32 1, %s859_s18   ;;  %p674_p7 = pnand %p634_p12, %p972_p11 }
 0x17c   : > { %s539_s24 = scalar_lea.sflag [#allocation6], %s538_s29 }
 0x17d   : > { %p675_p8 = pneg %p674_p7 }
 0x17f   : > { %850 = dma.done.wait (%p675_p8), %s539_s24, 16  }
 0x180   : > { %852 = vsyncadd (%p675_p8), %s539_s24, 4294967280  ;;  %s548_s25 = scalar_lea.sflag [#allocation9], %s538_s29 }
 0x181   : > { %854 = dma.done.wait (%p675_p8), %s548_s25, 16  }
 0x182   : > { %856 = vsyncadd (%p675_p8), %s548_s25, 4294967280  ;;  %s25_s23 = sadd.s32 1, %s879_s23   ;;  %s1191_s18 = smov %s863_s19 }
 0x183   : > { %p22_p10 = scmp.ge.s32.totalorder %s25_s23, 4   ;;  %s1192_s19 = smov %s867_s20 }
 0x184   : > { %s1193_s20 = smov %s970_s7  ;;  %s1194_s21 = smov %s875_s22 }
 0x185   : > { %s1195_s22 = smov %s1197_s26  ;;  %24 = sbr.rel (!%p22_p10) target bundleno = 8 (0x8), region = 106 }
 0x18a   :  { %553 = vsyncpa [#allocation5], 1 }
 0x18b   :  { %555 = vsyncpa [#allocation5 + $0x1], 1 }
 0x18c   :  { %556 = vsyncpa [#allocation6], 1 }
 0x18d   :  { %558 = vsyncpa [#allocation6 + $0x1], 1 }
 0x18e   :  { %559 = vsyncpa [#allocation9], 1 }
 0x18f   :  { %561 = vsyncpa [#allocation9 + $0x1], 1 }

</bundles_post_ra>
